<compile_context>
chip_gen: v7x
topology: tpu7x:2x2x1
jax: 0.10.0
libtpu: 0.0.40
codegen_flags: <defaults>
</compile_context>

<pallas_src>
import jax
import jax.numpy as jnp
from jax.experimental import pallas as pl
from jax.experimental.pallas import tpu as pltpu

BN_EPS = 1e-5
LANE = 128


def _round_up(x, m):
    return ((x + m - 1) // m) * m


def _vmem_limit_bytes():
    """Per-generation VMEM budget: ~3/4 of physical, capped (~96-100 MiB v5e/v6e, ~48 MiB v7x)."""
    try:
        cap = getattr(pltpu.get_tpu_info(), "vmem_capacity_bytes", None)
        if cap:
            return int(min(cap * 3 // 4, 100 * 1024 * 1024))
    except Exception:
        pass
    return 48 * 1024 * 1024  # conservative fallback that fits every generation


def _conv_stats_kernel(p_ref, w_ref, conv_ref, stats_ref):
    """One batch tile: bf16 im2col matmul (f32 MXU accumulation) + partial BN statistics."""
    # p_ref: (1, M, Kp) bf16, w_ref: (Kp, CP) bf16
    acc = jnp.dot(p_ref[0], w_ref[...], preferred_element_type=jnp.float32)   # (M, CP) f32
    conv_ref[0] = acc.astype(conv_ref.dtype)                                  # bf16 spill to HBM
    s = jnp.sum(acc, axis=0, keepdims=True)                                   # (1, CP)
    q = jnp.sum(acc * acc, axis=0, keepdims=True)                             # (1, CP)
    stats_ref[0] = jnp.concatenate([s, q], axis=0)                            # (2, CP)


def _bn_relu_kernel(conv_ref, scale_ref, shift_ref, o_ref):
    """One batch tile: folded BN (scale*x + shift) + ReLU, lane-dense store."""
    y = conv_ref[0].astype(jnp.float32) * scale_ref[...] + shift_ref[...]
    o_ref[0] = jnp.maximum(y, 0.0).astype(o_ref.dtype)


def conv_block_nonlinear_bn(x_nchw, w_oihw, bias, gamma, beta):
    """Forward of ConvBlockNonlinearBN. x_nchw: (N, C, H, W) float32 -> (N, C, H, W)."""
    N, C, H, W = x_nchw.shape
    HW = H * W
    CP = _round_up(C, LANE)        # lane-dense output-channel count
    Kp = _round_up(9 * C, LANE)    # packed im2col reduction dim (9*C taps padded once)

    # The conv bias is intentionally NOT applied: BatchNorm with batch statistics subtracts
    # the per-channel mean immediately after the conv, so a per-channel bias cancels exactly.
    del bias

    vmem_limit = _vmem_limit_bytes()

    # ---- choose the number of images per grid step: M = Nb*H*W (target >= 512 rows) ----
    per_img_bytes = HW * (Kp + CP) * 2 * 2          # bf16 patches + bf16 conv, double-buffered
    nb_vmem_cap = max(1, (vmem_limit // 2) // max(per_img_bytes, 1))
    Nb = max(1, min(N, nb_vmem_cap, max(1, 2048 // HW)))
    T = -(-N // Nb)                                 # number of batch tiles
    M = Nb * HW
    # TODO(synk): for very large H*W one tile exceeds the VMEM budget even at Nb=1; tile H
    #             with 1-row halos in that regime.

    # ---- wrapper-side layout: NCHW -> NHWC, "same" spatial pad, im2col, bf16 ----
    # TODO(synk): once C >= 128 wrapper-side im2col costs 9x input HBM; move it back into
    #             the kernel (9 accumulating dots / pltpu.roll shifts) for that regime, and
    #             tile output channels in multiples of 256 on v6e/v7x.
    x_nhwc = jnp.transpose(x_nchw, (0, 2, 3, 1))
    x_pad = jnp.pad(x_nhwc, ((0, 0), (1, 1), (1, 1), (0, 0)))
    cols = [x_pad[:, dy:dy + H, dx:dx + W, :] for dy in range(3) for dx in range(3)]
    patches = jnp.concatenate(cols, axis=-1)                                  # (N, H, W, 9C)
    patches = jnp.pad(patches, ((0, 0), (0, 0), (0, 0), (0, Kp - 9 * C)))
    patches = patches.reshape(N, HW, Kp).astype(jnp.bfloat16)
    pad_n = T * Nb - N
    if pad_n:  # zero images contribute 0 to the conv and 0 to the BN statistics
        patches = jnp.pad(patches, ((0, pad_n), (0, 0), (0, 0)))
    patches = patches.reshape(T, M, Kp)

    # OIHW -> (3,3,I,O) -> (9C, C); pad K and output channels; bf16 for the MXU.
    w_mat = jnp.transpose(w_oihw, (2, 3, 1, 0)).reshape(9 * C, C)
    w_mat = jnp.pad(w_mat, ((0, Kp - 9 * C), (0, CP - C))).astype(jnp.bfloat16)

    gamma_p = jnp.pad(gamma.astype(jnp.float32), (0, CP - C))
    beta_p = jnp.pad(beta.astype(jnp.float32), (0, CP - C))

    compiler_params = pltpu.CompilerParams(
        dimension_semantics=("parallel",),  # batch tiles are independent -> both TCs on v7x
        vmem_limit_bytes=vmem_limit,
    )

    # ---- kernel 1: conv (im2col matmul) + per-tile partial BN statistics ----
    conv_bf16, stats = pl.pallas_call(
        _conv_stats_kernel,
        out_shape=(
            jax.ShapeDtypeStruct((T, M, CP), jnp.bfloat16),   # pre-BN conv, spilled to HBM
            jax.ShapeDtypeStruct((T, 2, CP), jnp.float32),    # per-tile [sum; sum-of-squares]
        ),
        grid_spec=pltpu.PrefetchScalarGridSpec(
            num_scalar_prefetch=0,
            grid=(T,),
            in_specs=[
                pl.BlockSpec((1, M, Kp), lambda t: (t, 0, 0)),
                pl.BlockSpec((Kp, CP), lambda t: (0, 0)),
            ],
            out_specs=[
                pl.BlockSpec((1, M, CP), lambda t: (t, 0, 0)),
                pl.BlockSpec((1, 2, CP), lambda t: (t, 0, 0)),
            ],
        ),
        compiler_params=compiler_params,
    )(patches, w_mat)

    # ---- tiny XLA combine: global batch stats -> folded per-channel scale / shift ----
    # TODO(synk): for very large N*H*W switch to a centered (Welford-style) combine; the
    #             E[x^2]-E[x]^2 form can cancel catastrophically.
    count = float(N * HW)
    totals = jnp.sum(stats, axis=0)                   # (2, CP) f32
    mean = totals[0] / count
    var = jnp.maximum(totals[1] / count - mean * mean, 0.0)
    scale = gamma_p * jax.lax.rsqrt(var + BN_EPS)
    shift = beta_p - mean * scale
    scale = scale.reshape(1, CP)
    shift = shift.reshape(1, CP)

    # ---- kernel 2: fully parallel BN-apply + ReLU, lane-dense (CP = 128k) output ----
    out_tiles = pl.pallas_call(
        _bn_relu_kernel,
        out_shape=jax.ShapeDtypeStruct((T, M, CP), x_nchw.dtype),
        grid_spec=pltpu.PrefetchScalarGridSpec(
            num_scalar_prefetch=0,
            grid=(T,),
            in_specs=[
                pl.BlockSpec((1, M, CP), lambda t: (t, 0, 0)),
                pl.BlockSpec((1, CP), lambda t: (0, 0)),
                pl.BlockSpec((1, CP), lambda t: (0, 0)),
            ],
            out_specs=pl.BlockSpec((1, M, CP), lambda t: (t, 0, 0)),
        ),
        compiler_params=compiler_params,
    )(conv_bf16, scale, shift)

    # Drop batch / channel padding, NHWC -> NCHW to match the PyTorch output layout.
    y = out_tiles.reshape(T * Nb, H, W, CP)[:N, :, :, :C]
    return jnp.transpose(y, (0, 3, 1, 2))


def _reference(x_nchw, w_oihw, bias, gamma, beta):
    """Pure-JAX f32 reference (lax conv + batch-stat BN + relu) for validation."""
    y = jax.lax.conv_general_dilated(
        x_nchw, w_oihw, window_strides=(1, 1), padding="SAME",
        dimension_numbers=("NCHW", "OIHW", "NCHW"))
    y = y + bias.reshape(1, -1, 1, 1)
    mean = jnp.mean(y, axis=(0, 2, 3), keepdims=True)
    var = jnp.mean((y - mean) ** 2, axis=(0, 2, 3), keepdims=True)
    y = (y - mean) * jax.lax.rsqrt(var + BN_EPS)
    y = y * gamma.reshape(1, -1, 1, 1) + beta.reshape(1, -1, 1, 1)
    return jnp.maximum(y, 0.0)


if __name__ == "__main__":
    num_filters = 8
    N, H, W = 2, 16, 16

    key = jax.random.PRNGKey(0)
    kx, kw, kb, kg, kbe = jax.random.split(key, 5)

    x = jax.random.normal(kx, (N, num_filters, H, W), jnp.float32)
    # Deterministic synthetic parameters (shapes match nn.Conv2d / nn.BatchNorm2d).
    w = jax.random.normal(kw, (num_filters, num_filters, 3, 3), jnp.float32) * 0.1
    b = jax.random.normal(kb, (num_filters,), jnp.float32) * 0.1
    gamma = 1.0 + 0.1 * jax.random.normal(kg, (num_filters,), jnp.float32)
    beta = 0.1 * jax.random.normal(kbe, (num_filters,), jnp.float32)

    out = jax.block_until_ready(conv_block_nonlinear_bn(x, w, b, gamma, beta))
    ref = jax.block_until_ready(_reference(x, w, b, gamma, beta))

    assert out.shape == (N, num_filters, H, W)
    # bf16 MXU inputs + bf16 pre-BN spill vs the pure-f32 reference.
    max_diff = float(jnp.max(jnp.abs(out - ref)))
    assert jnp.allclose(out, ref, rtol=2e-2, atol=2e-2), (
        "mismatch vs reference: max abs diff = %f" % max_diff)

    print("KERNEL_OK")
</pallas_src>

<mosaic_0001>
module attributes {stable_mosaic.version = 11 : i64} {
  func.func @_conv_stats_kernel(%arg0: i32, %arg1: memref<1x512x128xbf16, #tpu.memory_space<vmem>>, %arg2: memref<128x128xbf16, #tpu.memory_space<vmem>>, %arg3: memref<1x512x128xbf16, #tpu.memory_space<vmem>>, %arg4: memref<1x2x128xf32, #tpu.memory_space<vmem>>) attributes {dimension_semantics = [#tpu.dimension_semantics<parallel>], iteration_bounds = array<i64: 1>, scalar_prefetch = 0 : i64, scratch_operands = 0 : i64, tpu.core_type = #tpu.core_type<tc>, window_params = [{transform_indices = @transform_0, window_bounds = array<i64: 1, 512, 128>}, {pipeline_mode = #tpu.pipeline_mode<synchronous>, transform_indices = @transform_1, window_bounds = array<i64: 128, 128>}, {transform_indices = @transform_2, window_bounds = array<i64: 1, 512, 128>}, {transform_indices = @transform_3, window_bounds = array<i64: 1, 2, 128>}]} {
    %c0 = arith.constant 0 : index
    %c0_0 = arith.constant 0 : index
    %c0_1 = arith.constant 0 : index
    %0 = vector.load %arg1[%c0, %c0_0, %c0_1] : memref<1x512x128xbf16, #tpu.memory_space<vmem>>, vector<1x512x128xbf16>
    %1 = vector.shape_cast %0 : vector<1x512x128xbf16> to vector<512x128xbf16>
    %c0_2 = arith.constant 0 : index
    %c0_3 = arith.constant 0 : index
    %2 = vector.load %arg2[%c0_2, %c0_3] : memref<128x128xbf16, #tpu.memory_space<vmem>>, vector<128x128xbf16>
    %cst = arith.constant dense<0.000000e+00> : vector<512x128xf32>
    %3 = tpu.matmul %1, %2, %cst {dimension_numbers = #tpu.dot_dimension_numbers<[1], [0], [0], [1], [0, 0, 1, 1], [], []>} : vector<512x128xbf16>, vector<128x128xbf16>, vector<512x128xf32> -> vector<512x128xf32>
    %4 = arith.truncf %3 : vector<512x128xf32> to vector<512x128xbf16>
    %c0_4 = arith.constant 0 : index
    %c0_5 = arith.constant 0 : index
    %c0_6 = arith.constant 0 : index
    %5 = vector.load %arg3[%c0_4, %c0_5, %c0_6] : memref<1x512x128xbf16, #tpu.memory_space<vmem>>, vector<1x512x128xbf16>
    %6 = vector.shape_cast %5 : vector<1x512x128xbf16> to vector<512x128xbf16>
    %7 = vector.shape_cast %4 : vector<512x128xbf16> to vector<1x512x128xbf16>
    tpu.vector_store %arg3[%c0_4, %c0_5, %c0_6], %7 {strides = array<i32>} : memref<1x512x128xbf16, #tpu.memory_space<vmem>>, vector<1x512x128xbf16>,
    %cst_7 = arith.constant dense<0.000000e+00> : vector<128xf32>
    %8 = vector.multi_reduction <add>, %3, %cst_7 [0] : vector<512x128xf32> to vector<128xf32>
    %9 = vector.shape_cast %8 : vector<128xf32> to vector<1x128xf32>
    %10 = arith.mulf %3, %3 : vector<512x128xf32>
    %cst_8 = arith.constant dense<0.000000e+00> : vector<128xf32>
    %11 = vector.multi_reduction <add>, %10, %cst_8 [0] : vector<512x128xf32> to vector<128xf32>
    %12 = vector.shape_cast %11 : vector<128xf32> to vector<1x128xf32>
    %13 = tpu.concatenate %9, %12 in 0 : vector<1x128xf32>, vector<1x128xf32> -> vector<2x128xf32>
    %c0_9 = arith.constant 0 : index
    %c0_10 = arith.constant 0 : index
    %c0_11 = arith.constant 0 : index
    %14 = vector.load %arg4[%c0_9, %c0_10, %c0_11] : memref<1x2x128xf32, #tpu.memory_space<vmem>>, vector<1x2x128xf32>
    %15 = vector.shape_cast %14 : vector<1x2x128xf32> to vector<2x128xf32>
    %16 = vector.shape_cast %13 : vector<2x128xf32> to vector<1x2x128xf32>
    tpu.vector_store %arg4[%c0_9, %c0_10, %c0_11], %16 {strides = array<i32>} : memref<1x2x128xf32, #tpu.memory_space<vmem>>, vector<1x2x128xf32>,
    return
  }
  func.func @transform_0(%arg0: i32) -> (i32, i32, i32) {
    %c0_i32 = arith.constant 0 : i32
    %c0_i32_0 = arith.constant 0 : i32
    %c0_i32_1 = arith.constant 0 : i32
    return %arg0, %c0_i32, %c0_i32_0 : i32, i32, i32
  }
  func.func @transform_1(%arg0: i32) -> (i32, i32) {
    %c0_i32 = arith.constant 0 : i32
    %c0_i32_0 = arith.constant 0 : i32
    %c0_i32_1 = arith.constant 0 : i32
    return %c0_i32, %c0_i32_0 : i32, i32
  }
  func.func @transform_2(%arg0: i32) -> (i32, i32, i32) {
    %c0_i32 = arith.constant 0 : i32
    %c0_i32_0 = arith.constant 0 : i32
    %c0_i32_1 = arith.constant 0 : i32
    return %arg0, %c0_i32, %c0_i32_0 : i32, i32, i32
  }
  func.func @transform_3(%arg0: i32) -> (i32, i32, i32) {
    %c0_i32 = arith.constant 0 : i32
    %c0_i32_0 = arith.constant 0 : i32
    %c0_i32_1 = arith.constant 0 : i32
    return %arg0, %c0_i32, %c0_i32_0 : i32, i32, i32
  }
}

</mosaic_0001>

<bundles_post_ra>
// kernel: tpu_custom_call.1
= control target key start
LH: loop header
LB: loop body
LE: loop exit
PB: predicated region body
PF: predicated region fallthrough
CT: control target
= control target key end

     0   :  { %9 = vsyncpa [#allocation3], 0  ;;  %s2122_s0 = inlined_call_operand.hbm [shape: bf16[1,512,128], index: 0, kind: input, shape index: {}]   ;;  %s2123_s1 = inlined_call_operand.hbm [shape: bf16[128,128], index: 1, kind: input, shape index: {}]   ;;  %s2124_s2 = inlined_call_operand.hbm [shape: bf16[1,512,128], index: 2, kind: output, shape index: {0}]   ;;  %s2125_s3 = inlined_call_operand.hbm [shape: f32[1,2,128], index: 3, kind: output, shape index: {1}]  }
   0x1   :  { %10 = vsyncpa [#allocation6], 0 }
   0x2   :  { %11 = vsyncpa [#allocation4], 0 }
   0x3   :  { %12 = vsyncpa [#allocation9], 0  ;;  %s1847_s12 = smov [#allocation2]   ;;  %s1751_s16 = scalar_lea.hbm %s2122_s0, 4096 }
   0x4   :  { %s18_s13 = sshll.u32 %s1847_s12, 4  ;;  %p1752_p0 = scmp.ne.s32.totalorder %s2122_s0, %s1751_s16  ;;  %s19_s13 = int_to_ptr.vmem [resolvable:$true] %s18_s13 }
   0x5   :  { %p1755_p1 = scmp.lt.u32.totalorder %s1751_s16, %s2122_s0 }
   0x7   :  { %p1757_p2 = pnand %p1755_p1, %p1752_p0 }
   0x9   :  { %1760 = shalt.err (!%p1757_p2)
}
   0xa   :  { %s1761_s21 = scalar_lea.vmem %s19_s13, 4096  ;;  %p1766_p4 = scmp.lt.s32.totalorder %s19_s13, %s19_s13 }
   0xb   :  { %p1762_p3 = scmp.ne.s32.totalorder %s19_s13, %s1761_s21  ;;  %p1767_p5 = scmp.lt.s32.totalorder %s1761_s21, %s1761_s21 }
   0xd   :  { %p1768_p6 = por %p1767_p5, %p1766_p4 }
   0xf   :  { %p1769_p7 = pnand %p1768_p6, %p1762_p3 }
  0x11   :  { %1772 = shalt.err (!%p1769_p7)
}
  0x12   :  { %s1848_s22 = smov 64   ;;  %s1849_s23 = smov 4  }
  0x13   :  { %24 = dma.hbm_to_vmem [thread:$0]  %s2122_s0, 4096, %s19_s13, [#allocation3], %s1848_s22, %s1848_s22, %s1849_s23  }
  0x14   :  { %s1850_s26 = smov [#allocation5]   ;;  %s1773_s30 = scalar_lea.hbm %s2123_s1, 1024 }
  0x15   :  { %s30_s27 = sshll.u32 %s1850_s26, 4  ;;  %p1774_p8 = scmp.ne.s32.totalorder %s2123_s1, %s1773_s30  ;;  %s31_s27 = int_to_ptr.vmem [resolvable:$true] %s30_s27 }
  0x16   :  { %p1777_p9 = scmp.lt.u32.totalorder %s1773_s30, %s2123_s1 }
  0x18   :  { %p1779_p10 = pnand %p1777_p9, %p1774_p8 }
  0x1a   :  { %1782 = shalt.err (!%p1779_p10)
}
  0x1b   :  { %s1783_s8 = scalar_lea.vmem %s31_s27, 1024  ;;  %p1788_p12 = scmp.lt.s32.totalorder %s31_s27, %s31_s27 }
  0x1c   :  { %p1784_p11 = scmp.ne.s32.totalorder %s31_s27, %s1783_s8  ;;  %p1789_p13 = scmp.lt.s32.totalorder %s1783_s8, %s1783_s8 }
  0x1e   :  { %p1790_p0 = por %p1789_p13, %p1788_p12 }
  0x20   :  { %p1791_p1 = pnand %p1790_p0, %p1784_p11 }
  0x22   :  { %1794 = shalt.err (!%p1791_p1)
}
  0x23   :  { %36 = dma.hbm_to_vmem [thread:$0]  %s2123_s1, 1024, %s31_s27, [#allocation6], %s1848_s22, %s1848_s22, %s1849_s23  }
  0x24   :  { %1839 = dma.done.wait [#allocation3], 4096  }
  0x25   :  { %1840 = vsyncadd [#allocation3], 4294963200 }
  0x26   :  { %1841 = dma.done.wait [#allocation6], 1024  }
  0x27   :  { %1842 = vsyncadd [#allocation6], 4294966272  ;;  %v1711_v0 = vld [vmem:[#allocation5] sm:$0xff]   ;;  %v1712_v1 = vld [vmem:[#allocation5 + $0x8] sm:$0xff]   ;;  %s1851_s1 = smov [#allocation7]  }
  0x28   :  { %1609 = vmatprep.subr.bf16.mxu0 %v1711_v0  ;;  %1689 = vmatprep.subr.bf16.mxu1 %v1711_v0  ;;  %v1713_v2 = vld [vmem:[#allocation5 + $0x10] sm:$0xff]   ;;  %v1714_v3 = vld [vmem:[#allocation5 + $0x18] sm:$0xff]   ;;  %v1719_v4 = vld [vmem:[#allocation2] sm:$0xff]   ;;  %s1183_s10 = sshll.u32 %s1851_s1, 4  ;;  %s1184_s10 = int_to_ptr.vmem [resolvable:$true] %s1183_s10 }
  0x29   :  { %1610 = vmatpush3.bf16.msra.mxu0 %v1711_v0  ;;  %1697 = vmatpush3.bf16.msra.mxu1 %v1711_v0  ;;  %v1715_v5 = vld [vmem:[#allocation5 + $0x20] sm:$0xff]   ;;  %v1716_v6 = vld [vmem:[#allocation5 + $0x28] sm:$0xff]   ;;  %v1717_v7 = vld [vmem:[#allocation5 + $0x30] sm:$0xff]   ;;  %s1795_s11 = scalar_lea.vmem %s1184_s10, 4096  ;;  %p1800_p3 = scmp.lt.s32.totalorder %s1184_s10, %s1184_s10 }
  0x2a   :  { %1611 = vmatprep.subr.bf16.mxu0 %v1712_v1  ;;  %1690 = vmatprep.subr.bf16.mxu1 %v1712_v1  ;;  %v1718_v8 = vld [vmem:[#allocation5 + $0x38] sm:$0xff]   ;;  %v1735_v9 = vld [vmem:[#allocation2 + $0x80] sm:$0xff]   ;;  %v1720_v10 = vld [vmem:[#allocation2 + $0x8] sm:$0xff]   ;;  %p1796_p2 = scmp.ne.s32.totalorder %s1184_s10, %s1795_s11  ;;  %p1801_p4 = scmp.lt.s32.totalorder %s1795_s11, %s1795_s11 }
  0x2b   :  { %1625 = vmatprep.mubr.bf16.mxu0 %v1719_v4  ;;  %1657 = vmatprep.mubr.bf16.mxu1 %v1735_v9  ;;  %v1721_v11 = vld [vmem:[#allocation2 + $0x10] sm:$0xff]   ;;  %v1736_v12 = vld [vmem:[#allocation2 + $0x88] sm:$0xff]   ;;  %v1722_v14 = vld [vmem:[#allocation2 + $0x18] sm:$0xff]  }
  0x2c   :  { %v1737_v13 = vld [vmem:[#allocation2 + $0x90] sm:$0xff]   ;;  %v1723_v15 = vld [vmem:[#allocation2 + $0x20] sm:$0xff]   ;;  %v1738_v16 = vld [vmem:[#allocation2 + $0x98] sm:$0xff]   ;;  %p1802_p5 = por %p1801_p4, %p1800_p3 }
  0x2d   :  { %1612 = vmatpush3.bf16.msra.mxu0 %v1712_v1  ;;  %1698 = vmatpush3.bf16.msra.mxu1 %v1712_v1  ;;  %v1739_v17 = vld [vmem:[#allocation2 + $0xa0] sm:$0xff]   ;;  %v1724_v18 = vld [vmem:[#allocation2 + $0x28] sm:$0xff]   ;;  %v1725_v20 = vld [vmem:[#allocation2 + $0x30] sm:$0xff]  }
  0x2e   :  { %1613 = vmatprep.subr.bf16.mxu0 %v1713_v2  ;;  %1691 = vmatprep.subr.bf16.mxu1 %v1713_v2  ;;  %v1740_v19 = vld [vmem:[#allocation2 + $0xa8] sm:$0xff]   ;;  %v1741_v21 = vld [vmem:[#allocation2 + $0xb0] sm:$0xff]   ;;  %v1726_v22 = vld [vmem:[#allocation2 + $0x38] sm:$0xff]   ;;  %p1803_p6 = pnand %p1802_p5, %p1796_p2 }
  0x2f   :  { %v1742_v23 = vld [vmem:[#allocation2 + $0xb8] sm:$0xff]   ;;  %v1727_v24 = vld [vmem:[#allocation2 + $0x40] sm:$0xff]   ;;  %v1728_v26 = vld [vmem:[#allocation2 + $0x48] sm:$0xff]  }
  0x30   :  { %v1743_v25 = vld [vmem:[#allocation2 + $0xc0] sm:$0xff]   ;;  %v1744_v27 = vld [vmem:[#allocation2 + $0xc8] sm:$0xff]   ;;  %v1729_v28 = vld [vmem:[#allocation2 + $0x50] sm:$0xff]  }
  0x31   :  { %1614 = vmatpush3.bf16.msra.mxu0 %v1713_v2  ;;  %1699 = vmatpush3.bf16.msra.mxu1 %v1713_v2  ;;  %v1745_v29 = vld [vmem:[#allocation2 + $0xd0] sm:$0xff]   ;;  %v1730_v30 = vld [vmem:[#allocation2 + $0x58] sm:$0xff]   ;;  %v1731_v32 = vld [vmem:[#allocation2 + $0x60] sm:$0xff]  }
  0x32   :  { %1615 = vmatprep.subr.bf16.mxu0 %v1714_v3  ;;  %1692 = vmatprep.subr.bf16.mxu1 %v1714_v3  ;;  %v1746_v31 = vld [vmem:[#allocation2 + $0xd8] sm:$0xff]   ;;  %v1747_v33 = vld [vmem:[#allocation2 + $0xe0] sm:$0xff]   ;;  %v1732_v34 = vld [vmem:[#allocation2 + $0x68] sm:$0xff]  }
  0x33   :  { %v1748_v35 = vld [vmem:[#allocation2 + $0xe8] sm:$0xff]   ;;  %v1733_v36 = vld [vmem:[#allocation2 + $0x70] sm:$0xff]   ;;  %v1734_v38 = vld [vmem:[#allocation2 + $0x78] sm:$0xff]  }
  0x34   :  { %v1749_v37 = vld [vmem:[#allocation2 + $0xf0] sm:$0xff]   ;;  %v1750_v39 = vld [vmem:[#allocation2 + $0xf8] sm:$0xff]  }
  0x35   :  { %1616 = vmatpush3.bf16.msra.mxu0 %v1714_v3  ;;  %1700 = vmatpush3.bf16.msra.mxu1 %v1714_v3 }
  0x36   :  { %1617 = vmatprep.subr.bf16.mxu0 %v1715_v5  ;;  %1693 = vmatprep.subr.bf16.mxu1 %v1715_v5 }
  0x39   :  { %1618 = vmatpush3.bf16.msra.mxu0 %v1715_v5  ;;  %1701 = vmatpush3.bf16.msra.mxu1 %v1715_v5 }
  0x3a   :  { %1619 = vmatprep.subr.bf16.mxu0 %v1716_v6  ;;  %1694 = vmatprep.subr.bf16.mxu1 %v1716_v6 }
  0x3d   :  { %1620 = vmatpush3.bf16.msra.mxu0 %v1716_v6  ;;  %1702 = vmatpush3.bf16.msra.mxu1 %v1716_v6 }
  0x3e   :  { %1621 = vmatprep.subr.bf16.mxu0 %v1717_v7  ;;  %1695 = vmatprep.subr.bf16.mxu1 %v1717_v7 }
  0x41   :  { %1622 = vmatpush3.bf16.msra.mxu0 %v1717_v7  ;;  %1703 = vmatpush3.bf16.msra.mxu1 %v1717_v7 }
  0x42   :  { %1623 = vmatprep.subr.bf16.mxu0 %v1718_v8  ;;  %1696 = vmatprep.subr.bf16.mxu1 %v1718_v8 }
  0x45   :  { %1624 = vmatpush3.bf16.msra.mxu0 %v1718_v8  ;;  %1704 = vmatpush3.bf16.msra.mxu1 %v1718_v8 }
  0x48   :  { %1626 = vmatmul.mubr.bf16.vlgmr.msra.gmra.mrb[0].mxu0 %v1720_v10  ;;  %1658 = vmatmul.mubr.bf16.vlgmr.msra.gmra.mrb[0].mxu1 %v1736_v12 }
  0x49   :  { %1629 = vmatprep.mubr.bf16.mxu0 %v1721_v11  ;;  %1661 = vmatprep.mubr.bf16.mxu1 %v1737_v13 }
  0x50   :  { %1630 = vmatmul.mubr.bf16.gmra.mrb[4].mxu0 %v1722_v14  ;;  %1662 = vmatmul.mubr.bf16.gmra.mrb[4].mxu1 %v1738_v16 }
  0x51   :  { %1633 = vmatprep.mubr.bf16.mxu0 %v1723_v15  ;;  %1665 = vmatprep.mubr.bf16.mxu1 %v1739_v17 }
  0x58   :  { %1634 = vmatmul.mubr.bf16.gmra.mrb[8].mxu0 %v1724_v18  ;;  %1666 = vmatmul.mubr.bf16.gmra.mrb[8].mxu1 %v1740_v19 }
  0x59   :  { %1637 = vmatprep.mubr.bf16.mxu0 %v1725_v20  ;;  %1669 = vmatprep.mubr.bf16.mxu1 %v1741_v21 }
  0x60   :  { %1638 = vmatmul.mubr.bf16.gmra.mrb[12].mxu0 %v1726_v22  ;;  %1670 = vmatmul.mubr.bf16.gmra.mrb[12].mxu1 %v1742_v23 }
  0x61   :  { %1641 = vmatprep.mubr.bf16.mxu0 %v1727_v24  ;;  %1673 = vmatprep.mubr.bf16.mxu1 %v1743_v25 }
  0x68   :  { %1642 = vmatmul.mubr.bf16.gmra.mrb[16].mxu0 %v1728_v26  ;;  %1674 = vmatmul.mubr.bf16.gmra.mrb[16].mxu1 %v1744_v27 }
  0x69   :  { %1645 = vmatprep.mubr.bf16.mxu0 %v1729_v28  ;;  %1677 = vmatprep.mubr.bf16.mxu1 %v1745_v29 }
  0x70   :  { %1646 = vmatmul.mubr.bf16.gmra.mrb[20].mxu0 %v1730_v30  ;;  %1678 = vmatmul.mubr.bf16.gmra.mrb[20].mxu1 %v1746_v31 }
  0x71   :  { %1649 = vmatprep.mubr.bf16.mxu0 %v1731_v32  ;;  %1681 = vmatprep.mubr.bf16.mxu1 %v1747_v33 }
  0x78   :  { %1650 = vmatmul.mubr.bf16.gmra.mrb[24].mxu0 %v1732_v34  ;;  %1682 = vmatmul.mubr.bf16.gmra.mrb[24].mxu1 %v1748_v35 }
  0x79   :  { %1653 = vmatprep.mubr.bf16.mxu0 %v1733_v36  ;;  %1685 = vmatprep.mubr.bf16.mxu1 %v1749_v37 }
  0x80   :  { %1654 = vmatmul.mubr.bf16.gmra.mrb[28].mxu0 %v1734_v38  ;;  %1686 = vmatmul.mubr.bf16.gmra.mrb[28].mxu1 %v1750_v39 }
 0x11b   :  { %v1627_v40 = vpop.f32.mrb[0].mxu0  ;;  %v1903_v41 = vpop.f32.mrb[0].mxu1 }
 0x11c   :  { %v398_v42 = vpop.f32.mrb[1].mxu0  ;;  %v1905_v43 = vpop.f32.mrb[1].mxu1  ;;  %v1044_v55 = vmul.f32 %v1627_v40, %v1627_v40 }
 0x11d   :  { %v1628_v44 = vpop.f32.mrb[2].mxu0  ;;  %v1907_v45 = vpop.f32.mrb[2].mxu1  ;;  %v1042_v46 = vmul.f32 %v398_v42, %v398_v42 }
 0x11e   :  { %v1386_v47 = vpack.c.bf16 %v1628_v44, %v1627_v40  ;;  %v401_v48 = vpop.f32.mrb[3].mxu0  ;;  %v1466_v49 = vpack.c.bf16 %v1907_v45, %v1903_v41  ;;  %v1911_v50 = vpop.f32.mrb[3].mxu1  ;;  %v1045_v58 = vmul.f32 %v1628_v44, %v1628_v44 }
 0x11f   :  { %v1381_v51 = vpack.c.bf16 %v401_v48, %v398_v42  ;;  %v973_v52 = vadd.f32 %v401_v48, %v398_v42  ;;  %v1043_v53 = vmul.f32 %v401_v48, %v401_v48  ;;  %v1461_v54 = vpack.c.bf16 %v1911_v50, %v1905_v43 }
 0x120   :  { %1538 = vst [vmem:[#allocation7 + $0x8] sm:$0xff] %v1386_v47   ;;  %1554 = vst [vmem:[#allocation7 + $0x88] sm:$0xff] %v1466_v49  }
 0x121   :  { %1382 = vst [vmem:[#allocation7] sm:$0xff] %v1381_v51   ;;  %v974_v56 = vadd.f32 %v1627_v40, %v973_v52  ;;  %v1106_v57 = vadd.f32 %v1043_v53, %v1042_v46  ;;  %1553 = vst [vmem:[#allocation7 + $0x80] sm:$0xff] %v1461_v54  }
 0x123   :  { %v1107_v59 = vadd.f32 %v1106_v57, %v1044_v55  ;;  %v1631_v60 = vpop.f32.mrb[4].mxu0  ;;  %v975_v61 = vadd.f32 %v1628_v44, %v974_v56  ;;  %v1915_v62 = vpop.f32.mrb[4].mxu1 }
 0x124   :  { %v414_v63 = vpop.f32.mrb[5].mxu0  ;;  %v1917_v0 = vpop.f32.mrb[5].mxu1  ;;  %v1048_v15 = vmul.f32 %v1631_v60, %v1631_v60 }
 0x125   :  { %v976_v1 = vadd.f32 %v975_v61, %v414_v63  ;;  %v1046_v2 = vmul.f32 %v414_v63, %v414_v63  ;;  %v1108_v3 = vadd.f32 %v1107_v59, %v1045_v58  ;;  %v1632_v4 = vpop.f32.mrb[6].mxu0  ;;  %v1919_v5 = vpop.f32.mrb[6].mxu1 }
 0x126   :  { %v1396_v6 = vpack.c.bf16 %v1632_v4, %v1631_v60  ;;  %v417_v7 = vpop.f32.mrb[7].mxu0  ;;  %v1476_v8 = vpack.c.bf16 %v1919_v5, %v1915_v62  ;;  %v1923_v9 = vpop.f32.mrb[7].mxu1  ;;  %v1049_v18 = vmul.f32 %v1632_v4, %v1632_v4 }
 0x127   :  { %v1109_v10 = vadd.f32 %v1108_v3, %v1046_v2  ;;  %v1391_v11 = vpack.c.bf16 %v417_v7, %v414_v63  ;;  %v977_v12 = vadd.f32 %v976_v1, %v417_v7  ;;  %v1047_v13 = vmul.f32 %v417_v7, %v417_v7 }
 0x128   :  { %1540 = vst [vmem:[#allocation7 + $0x18] sm:$0xff] %v1396_v6   ;;  %1556 = vst [vmem:[#allocation7 + $0x98] sm:$0xff] %v1476_v8   ;;  %v1471_v14 = vpack.c.bf16 %v1923_v9, %v1917_v0 }
 0x129   :  { %1539 = vst [vmem:[#allocation7 + $0x10] sm:$0xff] %v1391_v11   ;;  %v978_v16 = vadd.f32 %v1631_v60, %v977_v12  ;;  %v1110_v17 = vadd.f32 %v1109_v10, %v1047_v13 }
 0x12a   :  { %1555 = vst [vmem:[#allocation7 + $0x90] sm:$0xff] %v1471_v14  }
 0x12b   :  { %v1111_v19 = vadd.f32 %v1110_v17, %v1048_v15  ;;  %v1635_v20 = vpop.f32.mrb[8].mxu0  ;;  %v979_v21 = vadd.f32 %v1632_v4, %v978_v16  ;;  %v1927_v22 = vpop.f32.mrb[8].mxu1 }
 0x12c   :  { %v430_v23 = vpop.f32.mrb[9].mxu0  ;;  %v1929_v24 = vpop.f32.mrb[9].mxu1  ;;  %v1052_v39 = vmul.f32 %v1635_v20, %v1635_v20 }
 0x12d   :  { %v980_v25 = vadd.f32 %v979_v21, %v430_v23  ;;  %v1050_v26 = vmul.f32 %v430_v23, %v430_v23  ;;  %v1112_v27 = vadd.f32 %v1111_v19, %v1049_v18  ;;  %v1636_v28 = vpop.f32.mrb[10].mxu0  ;;  %v1931_v29 = vpop.f32.mrb[10].mxu1 }
 0x12e   :  { %v1406_v30 = vpack.c.bf16 %v1636_v28, %v1635_v20  ;;  %v433_v31 = vpop.f32.mrb[11].mxu0  ;;  %v1486_v32 = vpack.c.bf16 %v1931_v29, %v1927_v22  ;;  %v1935_v33 = vpop.f32.mrb[11].mxu1  ;;  %v1053_v44 = vmul.f32 %v1636_v28, %v1636_v28 }
 0x12f   :  { %v1113_v34 = vadd.f32 %v1112_v27, %v1050_v26  ;;  %v1401_v35 = vpack.c.bf16 %v433_v31, %v430_v23  ;;  %v981_v36 = vadd.f32 %v980_v25, %v433_v31  ;;  %v1051_v37 = vmul.f32 %v433_v31, %v433_v31 }
 0x130   :  { %1542 = vst [vmem:[#allocation7 + $0x28] sm:$0xff] %v1406_v30   ;;  %1558 = vst [vmem:[#allocation7 + $0xa8] sm:$0xff] %v1486_v32   ;;  %v1481_v38 = vpack.c.bf16 %v1935_v33, %v1929_v24 }
 0x131   :  { %1541 = vst [vmem:[#allocation7 + $0x20] sm:$0xff] %v1401_v35   ;;  %v982_v40 = vadd.f32 %v1635_v20, %v981_v36  ;;  %v1114_v42 = vadd.f32 %v1113_v34, %v1051_v37 }
 0x132   :  { %1557 = vst [vmem:[#allocation7 + $0xa0] sm:$0xff] %v1481_v38  }
 0x133   :  { %v1115_v46 = vadd.f32 %v1114_v42, %v1052_v39  ;;  %v1639_v47 = vpop.f32.mrb[12].mxu0  ;;  %v983_v48 = vadd.f32 %v1636_v28, %v982_v40  ;;  %v1939_v49 = vpop.f32.mrb[12].mxu1 }
 0x134   :  { %v446_v51 = vpop.f32.mrb[13].mxu0  ;;  %v1941_v52 = vpop.f32.mrb[13].mxu1  ;;  %v1056_v6 = vmul.f32 %v1639_v47, %v1639_v47 }
 0x135   :  { %v984_v53 = vadd.f32 %v983_v48, %v446_v51  ;;  %v1054_v54 = vmul.f32 %v446_v51, %v446_v51  ;;  %v1116_v55 = vadd.f32 %v1115_v46, %v1053_v44  ;;  %v1640_v56 = vpop.f32.mrb[14].mxu0  ;;  %v1943_v57 = vpop.f32.mrb[14].mxu1 }
 0x136   :  { %v1416_v58 = vpack.c.bf16 %v1640_v56, %v1639_v47  ;;  %v449_v59 = vpop.f32.mrb[15].mxu0  ;;  %v1496_v60 = vpack.c.bf16 %v1943_v57, %v1939_v49  ;;  %v1947_v61 = vpop.f32.mrb[15].mxu1  ;;  %v1057_v10 = vmul.f32 %v1640_v56, %v1640_v56 }
 0x137   :  { %v1117_v63 = vadd.f32 %v1116_v55, %v1054_v54  ;;  %v1411_v1 = vpack.c.bf16 %v449_v59, %v446_v51  ;;  %v985_v2 = vadd.f32 %v984_v53, %v449_v59  ;;  %v1055_v3 = vmul.f32 %v449_v59, %v449_v59 }
 0x138   :  { %1544 = vst [vmem:[#allocation7 + $0x38] sm:$0xff] %v1416_v58   ;;  %1560 = vst [vmem:[#allocation7 + $0xb8] sm:$0xff] %v1496_v60   ;;  %v1491_v4 = vpack.c.bf16 %v1947_v61, %v1941_v52 }
 0x139   :  { %1543 = vst [vmem:[#allocation7 + $0x30] sm:$0xff] %v1411_v1   ;;  %v986_v7 = vadd.f32 %v1639_v47, %v985_v2  ;;  %v1118_v8 = vadd.f32 %v1117_v63, %v1055_v3 }
 0x13a   :  { %1559 = vst [vmem:[#allocation7 + $0xb0] sm:$0xff] %v1491_v4  }
 0x13b   :  { %v1119_v11 = vadd.f32 %v1118_v8, %v1056_v6  ;;  %v1643_v12 = vpop.f32.mrb[16].mxu0  ;;  %v987_v13 = vadd.f32 %v1640_v56, %v986_v7  ;;  %v1951_v14 = vpop.f32.mrb[16].mxu1 }
 0x13c   :  { %v462_v15 = vpop.f32.mrb[17].mxu0  ;;  %v1953_v16 = vpop.f32.mrb[17].mxu1  ;;  %v1060_v35 = vmul.f32 %v1643_v12, %v1643_v12 }
 0x13d   :  { %v988_v17 = vadd.f32 %v987_v13, %v462_v15  ;;  %v1058_v18 = vmul.f32 %v462_v15, %v462_v15  ;;  %v1120_v19 = vadd.f32 %v1119_v11, %v1057_v10  ;;  %v1644_v20 = vpop.f32.mrb[18].mxu0  ;;  %v1955_v21 = vpop.f32.mrb[18].mxu1 }
 0x13e   :  { %v1426_v23 = vpack.c.bf16 %v1644_v20, %v1643_v12  ;;  %v465_v25 = vpop.f32.mrb[19].mxu0  ;;  %v1506_v26 = vpack.c.bf16 %v1955_v21, %v1951_v14  ;;  %v1959_v27 = vpop.f32.mrb[19].mxu1  ;;  %v1061_v38 = vmul.f32 %v1644_v20, %v1644_v20 }
 0x13f   :  { %v1121_v28 = vadd.f32 %v1120_v19, %v1058_v18  ;;  %v1421_v30 = vpack.c.bf16 %v465_v25, %v462_v15  ;;  %v989_v31 = vadd.f32 %v988_v17, %v465_v25  ;;  %v1059_v32 = vmul.f32 %v465_v25, %v465_v25 }
 0x140   :  { %1546 = vst [vmem:[#allocation7 + $0x48] sm:$0xff] %v1426_v23   ;;  %1562 = vst [vmem:[#allocation7 + $0xc8] sm:$0xff] %v1506_v26   ;;  %v1501_v34 = vpack.c.bf16 %v1959_v27, %v1953_v16 }
 0x141   :  { %1545 = vst [vmem:[#allocation7 + $0x40] sm:$0xff] %v1421_v30   ;;  %v990_v36 = vadd.f32 %v1643_v12, %v989_v31  ;;  %v1122_v37 = vadd.f32 %v1121_v28, %v1059_v32 }
 0x142   :  { %1561 = vst [vmem:[#allocation7 + $0xc0] sm:$0xff] %v1501_v34  }
 0x143   :  { %v1123_v39 = vadd.f32 %v1122_v37, %v1060_v35  ;;  %v1647_v40 = vpop.f32.mrb[20].mxu0  ;;  %v991_v42 = vadd.f32 %v1644_v20, %v990_v36  ;;  %v1963_v44 = vpop.f32.mrb[20].mxu1 }
 0x144   :  { %v478_v46 = vpop.f32.mrb[21].mxu0  ;;  %v1965_v47 = vpop.f32.mrb[21].mxu1  ;;  %v1064_v6 = vmul.f32 %v1647_v40, %v1647_v40 }
 0x145   :  { %v992_v48 = vadd.f32 %v991_v42, %v478_v46  ;;  %v1062_v51 = vmul.f32 %v478_v46, %v478_v46  ;;  %v1124_v53 = vadd.f32 %v1123_v39, %v1061_v38  ;;  %v1648_v54 = vpop.f32.mrb[22].mxu0  ;;  %v1967_v55 = vpop.f32.mrb[22].mxu1 }
 0x146   :  { %v1436_v56 = vpack.c.bf16 %v1648_v54, %v1647_v40  ;;  %v481_v58 = vpop.f32.mrb[23].mxu0  ;;  %v1516_v59 = vpack.c.bf16 %v1967_v55, %v1963_v44  ;;  %v1971_v60 = vpop.f32.mrb[23].mxu1  ;;  %v1065_v10 = vmul.f32 %v1648_v54, %v1648_v54 }
 0x147   :  { %v1125_v63 = vadd.f32 %v1124_v53, %v1062_v51  ;;  %v1431_v1 = vpack.c.bf16 %v481_v58, %v478_v46  ;;  %v993_v2 = vadd.f32 %v992_v48, %v481_v58  ;;  %v1063_v3 = vmul.f32 %v481_v58, %v481_v58 }
 0x148   :  { %1548 = vst [vmem:[#allocation7 + $0x58] sm:$0xff] %v1436_v56   ;;  %1564 = vst [vmem:[#allocation7 + $0xd8] sm:$0xff] %v1516_v59   ;;  %v1511_v4 = vpack.c.bf16 %v1971_v60, %v1965_v47 }
 0x149   :  { %1547 = vst [vmem:[#allocation7 + $0x50] sm:$0xff] %v1431_v1   ;;  %v994_v7 = vadd.f32 %v1647_v40, %v993_v2  ;;  %v1126_v8 = vadd.f32 %v1125_v63, %v1063_v3 }
 0x14a   :  { %1563 = vst [vmem:[#allocation7 + $0xd0] sm:$0xff] %v1511_v4  }
 0x14b   :  { %v1127_v11 = vadd.f32 %v1126_v8, %v1064_v6  ;;  %v1651_v12 = vpop.f32.mrb[24].mxu0  ;;  %v995_v13 = vadd.f32 %v1648_v54, %v994_v7  ;;  %v1975_v15 = vpop.f32.mrb[24].mxu1 }
 0x14c   :  { %v494_v17 = vpop.f32.mrb[25].mxu0  ;;  %v1977_v18 = vpop.f32.mrb[25].mxu1  ;;  %v1068_v39 = vmul.f32 %v1651_v12, %v1651_v12 }
 0x14d   :  { %v996_v19 = vadd.f32 %v995_v13, %v494_v17  ;;  %v1066_v20 = vmul.f32 %v494_v17, %v494_v17  ;;  %v1128_v23 = vadd.f32 %v1127_v11, %v1065_v10  ;;  %v1652_v25 = vpop.f32.mrb[26].mxu0  ;;  %v1979_v26 = vpop.f32.mrb[26].mxu1 }
 0x14e   :  { %v1446_v28 = vpack.c.bf16 %v1652_v25, %v1651_v12  ;;  %v497_v30 = vpop.f32.mrb[27].mxu0  ;;  %v1526_v31 = vpack.c.bf16 %v1979_v26, %v1975_v15  ;;  %v1983_v32 = vpop.f32.mrb[27].mxu1  ;;  %v1069_v46 = vmul.f32 %v1652_v25, %v1652_v25 }
 0x14f   :  { %v1129_v34 = vadd.f32 %v1128_v23, %v1066_v20  ;;  %v1441_v35 = vpack.c.bf16 %v497_v30, %v494_v17  ;;  %v997_v36 = vadd.f32 %v996_v19, %v497_v30  ;;  %v1067_v37 = vmul.f32 %v497_v30, %v497_v30 }
 0x150   :  { %1550 = vst [vmem:[#allocation7 + $0x68] sm:$0xff] %v1446_v28   ;;  %1566 = vst [vmem:[#allocation7 + $0xe8] sm:$0xff] %v1526_v31   ;;  %v1521_v38 = vpack.c.bf16 %v1983_v32, %v1977_v18  ;;  %v1074_v31 = vmul.f32 %v1905_v43, %v1905_v43 }
 0x151   :  { %1549 = vst [vmem:[#allocation7 + $0x60] sm:$0xff] %v1441_v35   ;;  %v998_v40 = vadd.f32 %v1651_v12, %v997_v36  ;;  %v1130_v42 = vadd.f32 %v1129_v34, %v1067_v37 }
 0x152   :  { %1565 = vst [vmem:[#allocation7 + $0xe0] sm:$0xff] %v1521_v38  }
 0x153   :  { %v1131_v48 = vadd.f32 %v1130_v42, %v1068_v39  ;;  %v1655_v51 = vpop.f32.mrb[28].mxu0  ;;  %v999_v53 = vadd.f32 %v1652_v25, %v998_v40  ;;  %v1987_v54 = vpop.f32.mrb[28].mxu1 }
 0x154   :  { %v510_v56 = vpop.f32.mrb[29].mxu0  ;;  %v1989_v58 = vpop.f32.mrb[29].mxu1  ;;  %v1072_v19 = vmul.f32 %v1655_v51, %v1655_v51 }
 0x155   :  { %v1000_v59 = vadd.f32 %v999_v53, %v510_v56  ;;  %v1070_v63 = vmul.f32 %v510_v56, %v510_v56  ;;  %v1132_v1 = vadd.f32 %v1131_v48, %v1069_v46  ;;  %v1656_v2 = vpop.f32.mrb[30].mxu0  ;;  %v1991_v3 = vpop.f32.mrb[30].mxu1 }
 0x156   :  { %v1456_v4 = vpack.c.bf16 %v1656_v2, %v1655_v51  ;;  %v513_v6 = vpop.f32.mrb[31].mxu0  ;;  %v1536_v7 = vpack.c.bf16 %v1991_v3, %v1987_v54  ;;  %v1995_v8 = vpop.f32.mrb[31].mxu1  ;;  %v1073_v25 = vmul.f32 %v1656_v2, %v1656_v2 }
 0x157   :  { %v1133_v10 = vadd.f32 %v1132_v1, %v1070_v63  ;;  %v1451_v11 = vpack.c.bf16 %v513_v6, %v510_v56  ;;  %v1001_v12 = vadd.f32 %v1000_v59, %v513_v6  ;;  %v1071_v13 = vmul.f32 %v513_v6, %v513_v6 }
 0x158   :  { %1552 = vst [vmem:[#allocation7 + $0x78] sm:$0xff] %v1456_v4   ;;  %1568 = vst [vmem:[#allocation7 + $0xf8] sm:$0xff] %v1536_v7   ;;  %v1531_v17 = vpack.c.bf16 %v1995_v8, %v1989_v58 }
 0x159   :  { %1551 = vst [vmem:[#allocation7 + $0x70] sm:$0xff] %v1451_v11   ;;  %v1002_v20 = vadd.f32 %v1655_v51, %v1001_v12  ;;  %v1134_v23 = vadd.f32 %v1133_v10, %v1071_v13 }
 0x15a   :  { %1567 = vst [vmem:[#allocation7 + $0xf0] sm:$0xff] %v1531_v17  }
 0x15b   :  { %v1135_v28 = vadd.f32 %v1134_v23, %v1072_v19  ;;  %v1003_v30 = vadd.f32 %v1656_v2, %v1002_v20 }
 0x15c   :  { %1806 = shalt.err (!%p1803_p6)
}
 0x15d   :  { %s1807_s14 = scalar_lea.hbm %s2124_s2, 4096 }
 0x15e   :  { %p1808_p7 = scmp.ne.s32.totalorder %s2124_s2, %s1807_s14  ;;  %p1811_p8 = scmp.lt.u32.totalorder %s1807_s14, %s2124_s2 }
 0x160   :  { %p1813_p9 = pnand %p1811_p8, %p1808_p7 }
 0x162   :  { %1816 = shalt.err (!%p1813_p9)
}
 0x163   :  { %1189 = dma.vmem_to_hbm [thread:$0]  %s1184_s10, 4096, %s2124_s2, [#allocation4], %s1848_s22, %s1848_s22, %s1849_s23   ;;  %v1004_v34 = vadd.f32 %v1003_v30, %v1905_v43  ;;  %v1136_v35 = vadd.f32 %v1135_v28, %v1073_v25  ;;  %v1075_v38 = vmul.f32 %v1911_v50, %v1911_v50  ;;  %v1076_v39 = vmul.f32 %v1903_v41, %v1903_v41 }
 0x164   :  { %v1077_v46 = vmul.f32 %v1907_v45, %v1907_v45  ;;  %v1078_v43 = vmul.f32 %v1917_v0, %v1917_v0  ;;  %v1079_v63 = vmul.f32 %v1923_v9, %v1923_v9  ;;  %v1083_v12 = vmul.f32 %v1935_v33, %v1935_v33  ;;  %s1852_s2 = smov [#allocation8]  }
 0x165   :  { %v1137_v36 = vadd.f32 %v1136_v35, %v1074_v31  ;;  %v1005_v37 = vadd.f32 %v1004_v34, %v1911_v50  ;;  %v1087_v30 = vmul.f32 %v1947_v61, %v1947_v61  ;;  %s1196_s21 = sshll.u32 %s1852_s2, 4  ;;  %vm1175_vm0 = vcmask 1040384   ;;  %s1197_s21 = int_to_ptr.vmem [resolvable:$true] %s1196_s21 }
 0x166   :  { %s1817_s22 = scalar_lea.vmem %s1197_s21, 32  ;;  %p1822_p11 = scmp.lt.s32.totalorder %s1197_s21, %s1197_s21 }
 0x167   :  { %v1006_v40 = vadd.f32 %v1903_v41, %v1005_v37  ;;  %v1138_v42 = vadd.f32 %v1137_v36, %v1075_v38  ;;  %v1080_v41 = vmul.f32 %v1915_v62, %v1915_v62  ;;  %p1818_p10 = scmp.ne.s32.totalorder %s1197_s21, %s1817_s22  ;;  %p1823_p12 = scmp.lt.s32.totalorder %s1817_s22, %s1817_s22 }
 0x169   :  { %v1139_v48 = vadd.f32 %v1138_v42, %v1076_v39  ;;  %v1007_v51 = vadd.f32 %v1907_v45, %v1006_v40  ;;  %v1081_v45 = vmul.f32 %v1919_v5, %v1919_v5  ;;  %v1091_v40 = vmul.f32 %v1959_v27, %v1959_v27  ;;  %p1824_p13 = por %p1823_p12, %p1822_p11 }
 0x16b   :  { %v1008_v53 = vadd.f32 %v1007_v51, %v1917_v0  ;;  %v1140_v56 = vadd.f32 %v1139_v48, %v1077_v46  ;;  %v1082_v0 = vmul.f32 %v1929_v24, %v1929_v24  ;;  %p1825_p0 = pnand %p1824_p13, %p1818_p10 }
 0x16d   :  { %v1141_v59 = vadd.f32 %v1140_v56, %v1078_v43  ;;  %v1009_v50 = vadd.f32 %v1008_v53, %v1923_v9 }
 0x16f   :  { %v1010_v1 = vadd.f32 %v1915_v62, %v1009_v50  ;;  %v1142_v2 = vadd.f32 %v1141_v59, %v1079_v63  ;;  %v1084_v62 = vmul.f32 %v1927_v22, %v1927_v22  ;;  %v1095_v59 = vmul.f32 %v1971_v60, %v1971_v60 }
 0x171   :  { %v1143_v4 = vadd.f32 %v1142_v2, %v1080_v41  ;;  %v1011_v6 = vadd.f32 %v1919_v5, %v1010_v1  ;;  %v1085_v5 = vmul.f32 %v1931_v29, %v1931_v29 }
 0x173   :  { %v1012_v7 = vadd.f32 %v1011_v6, %v1929_v24  ;;  %v1144_v10 = vadd.f32 %v1143_v4, %v1081_v45  ;;  %v1086_v24 = vmul.f32 %v1941_v52, %v1941_v52  ;;  %v1099_v6 = vmul.f32 %v1983_v32, %v1983_v32 }
 0x175   :  { %v1145_v11 = vadd.f32 %v1144_v10, %v1082_v0  ;;  %v1013_v9 = vadd.f32 %v1012_v7, %v1935_v33 }
 0x177   :  { %v1014_v13 = vadd.f32 %v1927_v22, %v1013_v9  ;;  %v1146_v17 = vadd.f32 %v1145_v11, %v1083_v12  ;;  %v1088_v22 = vmul.f32 %v1939_v49, %v1939_v49 }
 0x179   :  { %v1147_v19 = vadd.f32 %v1146_v17, %v1084_v62  ;;  %v1015_v20 = vadd.f32 %v1931_v29, %v1014_v13  ;;  %v1089_v29 = vmul.f32 %v1943_v57, %v1943_v57  ;;  %v1103_v13 = vmul.f32 %v1995_v8, %v1995_v8 }
 0x17b   :  { %v1016_v23 = vadd.f32 %v1015_v20, %v1941_v52  ;;  %v1148_v25 = vadd.f32 %v1147_v19, %v1085_v5  ;;  %v1090_v52 = vmul.f32 %v1953_v16, %v1953_v16 }
 0x17d   :  { %v1149_v28 = vadd.f32 %v1148_v25, %v1086_v24  ;;  %v1017_v33 = vadd.f32 %v1016_v23, %v1947_v61 }
 0x17f   :  { %v1018_v31 = vadd.f32 %v1939_v49, %v1017_v33  ;;  %v1150_v34 = vadd.f32 %v1149_v28, %v1087_v30  ;;  %v1092_v49 = vmul.f32 %v1951_v14, %v1951_v14 }
 0x181   :  { %v1151_v35 = vadd.f32 %v1150_v34, %v1088_v22  ;;  %v1019_v36 = vadd.f32 %v1943_v57, %v1018_v31  ;;  %v1093_v57 = vmul.f32 %v1955_v21, %v1955_v21 }
 0x183   :  { %v1020_v37 = vadd.f32 %v1019_v36, %v1953_v16  ;;  %v1152_v38 = vadd.f32 %v1151_v35, %v1089_v29  ;;  %v1094_v16 = vmul.f32 %v1965_v47, %v1965_v47 }
 0x185   :  { %v1153_v39 = vadd.f32 %v1152_v38, %v1090_v52  ;;  %v1021_v61 = vadd.f32 %v1020_v37, %v1959_v27 }
 0x187   :  { %v1022_v42 = vadd.f32 %v1951_v14, %v1021_v61  ;;  %v1154_v46 = vadd.f32 %v1153_v39, %v1091_v40  ;;  %v1096_v14 = vmul.f32 %v1963_v44, %v1963_v44 }
 0x189   :  { %v1155_v48 = vadd.f32 %v1154_v46, %v1092_v49  ;;  %v1023_v51 = vadd.f32 %v1955_v21, %v1022_v42  ;;  %v1097_v21 = vmul.f32 %v1967_v55, %v1967_v55 }
 0x18b   :  { %v1024_v43 = vadd.f32 %v1023_v51, %v1965_v47  ;;  %v1156_v53 = vadd.f32 %v1155_v48, %v1093_v57  ;;  %v1098_v47 = vmul.f32 %v1977_v18, %v1977_v18 }
 0x18d   :  { %v1157_v56 = vadd.f32 %v1156_v53, %v1094_v16  ;;  %v1025_v27 = vadd.f32 %v1024_v43, %v1971_v60 }
 0x18f   :  { %v1026_v50 = vadd.f32 %v1963_v44, %v1025_v27  ;;  %v1158_v63 = vadd.f32 %v1157_v56, %v1095_v59  ;;  %v1100_v44 = vmul.f32 %v1975_v15, %v1975_v15 }
 0x191   :  { %v1159_v41 = vadd.f32 %v1158_v63, %v1096_v14  ;;  %v1027_v1 = vadd.f32 %v1967_v55, %v1026_v50  ;;  %v1101_v55 = vmul.f32 %v1979_v26, %v1979_v26 }
 0x193   :  { %v1028_v2 = vadd.f32 %v1027_v1, %v1977_v18  ;;  %v1160_v45 = vadd.f32 %v1159_v41, %v1097_v21  ;;  %v1102_v18 = vmul.f32 %v1989_v58, %v1989_v58 }
 0x195   :  { %v1161_v4 = vadd.f32 %v1160_v45, %v1098_v47  ;;  %v1029_v60 = vadd.f32 %v1028_v2, %v1983_v32 }
 0x197   :  { %v1030_v0 = vadd.f32 %v1975_v15, %v1029_v60  ;;  %v1162_v7 = vadd.f32 %v1161_v4, %v1099_v6  ;;  %v1104_v15 = vmul.f32 %v1987_v54, %v1987_v54 }
 0x199   :  { %v1163_v10 = vadd.f32 %v1162_v7, %v1100_v44  ;;  %v1031_v11 = vadd.f32 %v1979_v26, %v1030_v0  ;;  %v1105_v26 = vmul.f32 %v1991_v3, %v1991_v3 }
 0x19b   :  { %v1032_v9 = vadd.f32 %v1031_v11, %v1989_v58  ;;  %v1164_v12 = vadd.f32 %v1163_v10, %v1101_v55 }
 0x19d   :  { %v1165_v62 = vadd.f32 %v1164_v12, %v1102_v18  ;;  %v1033_v32 = vadd.f32 %v1032_v9, %v1995_v8 }
 0x19f   :  { %v1034_v17 = vadd.f32 %v1987_v54, %v1033_v32  ;;  %v1166_v5 = vadd.f32 %v1165_v62, %v1103_v13 }
 0x1a1   :  { %v1035_v19 = vadd.f32 %v1991_v3, %v1034_v17  ;;  %v1167_v20 = vadd.f32 %v1166_v5, %v1104_v15 }
 0x1a3   :  { %v1036_v58 = vrot.slane %v1035_v19, 4  ;;  %v1168_v24 = vadd.f32 %v1167_v20, %v1105_v26 }
 0x1a5   :  { %v1037_v23 = vadd.f32 %v1036_v58, %v1035_v19  ;;  %v1169_v25 = vrot.slane %v1168_v24, 4 }
 0x1a7   :  { %v1038_v28 = vrot.slane %v1037_v23, 2  ;;  %v1170_v33 = vadd.f32 %v1169_v25, %v1168_v24 }
 0x1a9   :  { %v1039_v30 = vadd.f32 %v1038_v28, %v1037_v23  ;;  %v1171_v8 = vrot.slane %v1170_v33, 2 }
 0x1ab   :  { %v1040_v22 = vrot.slane %v1039_v30, 1  ;;  %v1172_v31 = vadd.f32 %v1171_v8, %v1170_v33 }
 0x1ad   :  { %v1173_v34 = vrot.slane %v1172_v31, 1  ;;  %v1041_v54 = vadd.f32 %v1040_v22, %v1039_v30 }
 0x1af   :  { %v1174_v29 = vadd.f32 %v1173_v34, %v1172_v31 }
 0x1b1   :  { %v1176_v35 = vsel %vm1175_vm0, %v1041_v54, %v1174_v29 }
 0x1b2   :  { %1177 = vst [vmem:[#allocation8] sm:$0x3] %v1176_v35 }
 0x1b3   :  { %1828 = shalt.err (!%p1825_p0)
}
 0x1b4   :  { %s1829_s25 = scalar_lea.hbm %s2125_s3, 32 }
 0x1b5   :  { %p1830_p1 = scmp.ne.s32.totalorder %s2125_s3, %s1829_s25  ;;  %p1833_p2 = scmp.lt.u32.totalorder %s1829_s25, %s2125_s3 }
 0x1b7   :  { %p1835_p3 = pnand %p1833_p2, %p1830_p1 }
 0x1b9   :  { %1838 = shalt.err (!%p1835_p3)
}
 0x1ba   :  { %1199 = dma.vmem_to_hbm [thread:$0]  %s1197_s21, 32, %s2125_s3, [#allocation9]  }
 0x1bb   :  { %1843 = dma.done.wait [#allocation4], 4096  }
 0x1bc   :  { %1844 = vsyncadd [#allocation4], 4294963200 }
 0x1bd   :  { %1845 = dma.done.wait [#allocation9], 32  }
 0x1be   :  { %1846 = vsyncadd [#allocation9], 4294967264 }
 0x1bf   :  { %1206 = vsyncpa [#allocation3], 1 }
 0x1c0   :  { %1207 = vsyncpa [#allocation6], 1 }
 0x1c1   :  { %1208 = vsyncpa [#allocation4], 1 }
 0x1c2   :  { %1209 = vsyncpa [#allocation9], 1 }

</bundles_post_ra>
